<compile_context>
chip_gen: v6e
topology: v6e:2x2x1
jax: 0.10.0
libtpu: 0.0.40
codegen_flags: <defaults>
</compile_context>

<pallas_src>
import functools

import jax
import jax.numpy as jnp
from jax.experimental import pallas as pl
from jax.experimental.pallas import tpu as pltpu


def _focal_loss_kernel(logits_ref, targets_ref, alpha_ref, out_ref, acc_ref,
                       *, n_rows, tile_n, gamma, size_average):
    i = pl.program_id(0)

    @pl.when(i == 0)
    def _init():
        acc_ref[...] = jnp.zeros_like(acc_ref)

    x = logits_ref[...].astype(jnp.float32)        # (tile_n, C) logits
    t = targets_ref[...]                           # (tile_n, 1) int32 class id
    a = alpha_ref[...].astype(jnp.float32)         # (1, C) per-class alpha
    tn, C = x.shape

    # Row-wise softmax statistics in log-sum-exp form (no (tile_n, C) P tensor).
    m = jnp.max(x, axis=1, keepdims=True)                    # (tile_n, 1)
    e = jnp.exp(x - m)                                       # (tile_n, C)
    denom = jnp.sum(e, axis=1, keepdims=True)                # (tile_n, 1)

    # One-hot of the target class, built in-kernel (replaces scatter_).
    col = jax.lax.broadcasted_iota(jnp.int32, (tn, C), 1)
    onehot = (col == t).astype(jnp.float32)                  # (tile_n, C)

    x_t = jnp.sum(x * onehot, axis=1, keepdims=True)         # logit at target
    alpha_t = jnp.sum(a * onehot, axis=1, keepdims=True)     # alpha[target]

    log_p = (x_t - m) - jnp.log(denom)                       # log P[n, t[n]]
    probs = jnp.exp(log_p)                                   # P[n, t[n]]
    one_minus = 1.0 - probs
    if gamma == 2:
        focal_w = one_minus * one_minus                      # exact square
    else:
        focal_w = one_minus ** gamma
    per_row = -alpha_t * focal_w * log_p                     # (tile_n, 1)

    # Mask padded rows of the (possibly partial) last tile.
    row = jax.lax.broadcasted_iota(jnp.int32, (tn, 1), 0) + i * tile_n
    per_row = jnp.where(row < n_rows, per_row, 0.0)

    acc_ref[...] += jnp.sum(per_row, keepdims=True)          # (1, 1)

    @pl.when(i == pl.num_programs(0) - 1)
    def _finalize():
        if size_average:
            out_ref[...] = acc_ref[...] * (1.0 / n_rows)     # mean over true N
        else:
            out_ref[...] = acc_ref[...]


def _round_up(x, m):
    return ((x + m - 1) // m) * m


def focal_loss(logits, targets, alpha, *, gamma=2, size_average=True,
               tile_n=512):
    """Pallas forward of FocalLoss.

    logits:  (N, C) float (any float dtype; upcast to f32 inside the kernel)
    targets: (N,)   int class ids
    alpha:   (C,) or (C, 1) per-class weights
    """
    N, C = logits.shape
    targets2d = targets.reshape(N, 1).astype(jnp.int32)
    alpha_row = jnp.asarray(alpha).reshape(1, C).astype(jnp.float32)

    # Tile budget: keep 2x double-buffered logit slabs under ~8 MiB so the
    # pipeline never exceeds the smallest default scoped-VMEM limit (v5e).
    itemsize = jnp.dtype(logits.dtype).itemsize
    cap = max(8, (8 * 1024 * 1024) // max(1, 2 * C * itemsize))
    cap = max(8, (cap // 8) * 8)
    tile_n = min(_round_up(max(tile_n, 8), 8), cap, _round_up(N, 8))
    grid = (pl.cdiv(N, tile_n),)

    kernel = functools.partial(
        _focal_loss_kernel,
        n_rows=N, tile_n=tile_n, gamma=gamma, size_average=size_average)

    out = pl.pallas_call(
        kernel,
        out_shape=jax.ShapeDtypeStruct((1, 1), jnp.float32),
        grid=grid,
        in_specs=[
            pl.BlockSpec((tile_n, C), lambda i: (i, 0)),   # logits tile
            pl.BlockSpec((tile_n, 1), lambda i: (i, 0)),   # targets tile
            pl.BlockSpec((1, C), lambda i: (0, 0)),        # alpha (resident)
        ],
        out_specs=pl.BlockSpec((1, 1), lambda i: (0, 0)),  # scalar result
        scratch_shapes=[pltpu.VMEM((1, 1), jnp.float32)],  # running sum
        compiler_params=pltpu.CompilerParams(
            dimension_semantics=("arbitrary",),            # accumulator axis
            vmem_limit_bytes=32 * 1024 * 1024,
        ),
    )(logits, targets2d, alpha_row)
    return out[0, 0]


def _reference(logits, targets, alpha, gamma=2, size_average=True):
    """Pure-JAX reference of the PyTorch FocalLoss forward."""
    x = logits.astype(jnp.float32)
    log_p_all = jax.nn.log_softmax(x, axis=1)
    n = x.shape[0]
    log_p = log_p_all[jnp.arange(n), targets]
    probs = jnp.exp(log_p)
    alpha_t = jnp.asarray(alpha).reshape(-1)[targets]
    batch_loss = -alpha_t * (1.0 - probs) ** gamma * log_p
    return batch_loss.mean() if size_average else batch_loss.sum()


if __name__ == "__main__":
    key = jax.random.PRNGKey(0)

    # ---- Case 1: module-sized demo: batch N=8, class_num C=4, f32 logits ----
    N, C = 8, 4
    k1, k2, k3, k4 = jax.random.split(key, 4)
    logits = jax.random.normal(k1, (N, C), dtype=jnp.float32)
    targets = jax.random.randint(k2, (N,), 0, C, dtype=jnp.int32)
    # FocalLoss.__init__ with alpha=None -> alpha = 0.25 * ones(class_num, 1)
    alpha = jnp.full((C, 1), 0.25, dtype=jnp.float32)

    loss = focal_loss(logits, targets, alpha)
    jax.block_until_ready(loss)
    ref = _reference(logits, targets, alpha)
    assert jnp.allclose(loss, ref, rtol=1e-5, atol=1e-6), (loss, ref)

    # ---- Case 2: bf16 logits, multi-tile grid with a partial last tile ----
    N2, C2 = 37, 4
    logits2 = jax.random.normal(k3, (N2, C2), dtype=jnp.float32)
    logits2_bf16 = logits2.astype(jnp.bfloat16)     # native-dtype DMA path
    targets2 = jax.random.randint(k4, (N2,), 0, C2, dtype=jnp.int32)
    alpha2 = jnp.full((C2, 1), 0.25, dtype=jnp.float32)

    loss2 = focal_loss(logits2_bf16, targets2, alpha2, tile_n=16)
    jax.block_until_ready(loss2)
    ref2 = _reference(logits2_bf16.astype(jnp.float32), targets2, alpha2)
    assert jnp.allclose(loss2, ref2, rtol=1e-5, atol=1e-6), (loss2, ref2)

    print("KERNEL_OK")
</pallas_src>

<mosaic_0001>
module attributes {stable_mosaic.version = 11 : i64} {
  func.func @_focal_loss_kernel(%arg0: i32, %arg1: memref<8x4xf32, #tpu.memory_space<vmem>>, %arg2: memref<8x1xi32, #tpu.memory_space<vmem>>, %arg3: memref<1x4xf32, #tpu.memory_space<vmem>>, %arg4: memref<1x1xf32, #tpu.memory_space<vmem>>, %arg5: memref<1x1xf32, #tpu.memory_space<vmem>>) attributes {dimension_semantics = [#tpu.dimension_semantics<arbitrary>], iteration_bounds = array<i64: 1>, scalar_prefetch = 0 : i64, scratch_operands = 1 : i64, tpu.core_type = #tpu.core_type<tc>, window_params = [{transform_indices = @transform_0, window_bounds = array<i64: 8, 4>}, {transform_indices = @transform_1, window_bounds = array<i64: 8, 1>}, {pipeline_mode = #tpu.pipeline_mode<synchronous>, transform_indices = @transform_2, window_bounds = array<i64: 1, 4>}, {pipeline_mode = #tpu.pipeline_mode<synchronous>, transform_indices = @transform_3, window_bounds = array<i64: 1, 1>}]} {
    %c0_i32 = arith.constant 0 : i32
    %0 = arith.cmpi eq, %arg0, %c0_i32 : i32
    %1 = arith.extui %0 : i1 to i32
    %c0_i32_0 = arith.constant 0 : i32
    %2 = arith.cmpi ne, %1, %c0_i32_0 : i32
    scf.if %2 {
      %cst_20 = arith.constant 0.000000e+00 : f32
      %55 = vector.broadcast %cst_20 : f32 to vector<1x1xf32>
      %c0_21 = arith.constant 0 : index
      %c0_22 = arith.constant 0 : index
      %56 = vector.load %arg5[%c0_21, %c0_22] : memref<1x1xf32, #tpu.memory_space<vmem>>, vector<1x1xf32>
      tpu.vector_store %arg5[%c0_21, %c0_22], %55 {strides = array<i32>} : memref<1x1xf32, #tpu.memory_space<vmem>>, vector<1x1xf32>,
    } else {
    }
    %c0 = arith.constant 0 : index
    %c0_1 = arith.constant 0 : index
    %3 = vector.load %arg1[%c0, %c0_1] : memref<8x4xf32, #tpu.memory_space<vmem>>, vector<8x4xf32>
    %c0_2 = arith.constant 0 : index
    %c0_3 = arith.constant 0 : index
    %4 = vector.load %arg2[%c0_2, %c0_3] : memref<8x1xi32, #tpu.memory_space<vmem>>, vector<8x1xi32>
    %c0_4 = arith.constant 0 : index
    %c0_5 = arith.constant 0 : index
    %5 = vector.load %arg3[%c0_4, %c0_5] : memref<1x4xf32, #tpu.memory_space<vmem>>, vector<1x4xf32>
    %cst = arith.constant dense<0xFF800000> : vector<8xf32>
    %6 = vector.multi_reduction <maximumf>, %3, %cst [1] : vector<8x4xf32> to vector<8xf32>
    %7 = vector.shape_cast %6 : vector<8xf32> to vector<8x1xf32>
    %8 = vector.broadcast %7 : vector<8x1xf32> to vector<8x4xf32>
    %9 = arith.subf %3, %8 : vector<8x4xf32>
    %10 = math.exp %9 : vector<8x4xf32>
    %cst_6 = arith.constant dense<0.000000e+00> : vector<8xf32>
    %11 = vector.multi_reduction <add>, %10, %cst_6 [1] : vector<8x4xf32> to vector<8xf32>
    %12 = vector.shape_cast %11 : vector<8xf32> to vector<8x1xf32>
    %13 = tpu.iota {dimensions = array<i32: 1>} : vector<8x4xi32>
    %14 = vector.broadcast %4 : vector<8x1xi32> to vector<8x4xi32>
    %15 = arith.cmpi eq, %13, %14 : vector<8x4xi32>
    %16 = arith.extui %15 : vector<8x4xi1> to vector<8x4xi32>
    %17 = arith.sitofp %16 : vector<8x4xi32> to vector<8x4xf32>
    %18 = arith.mulf %3, %17 : vector<8x4xf32>
    %cst_7 = arith.constant dense<0.000000e+00> : vector<8xf32>
    %19 = vector.multi_reduction <add>, %18, %cst_7 [1] : vector<8x4xf32> to vector<8xf32>
    %20 = vector.shape_cast %19 : vector<8xf32> to vector<8x1xf32>
    %21 = vector.broadcast %5 : vector<1x4xf32> to vector<8x4xf32>
    %22 = arith.mulf %21, %17 : vector<8x4xf32>
    %cst_8 = arith.constant dense<0.000000e+00> : vector<8xf32>
    %23 = vector.multi_reduction <add>, %22, %cst_8 [1] : vector<8x4xf32> to vector<8xf32>
    %24 = vector.shape_cast %23 : vector<8xf32> to vector<8x1xf32>
    %25 = arith.subf %20, %7 : vector<8x1xf32>
    %26 = math.log %12 : vector<8x1xf32>
    %27 = arith.subf %25, %26 : vector<8x1xf32>
    %28 = math.exp %27 : vector<8x1xf32>
    %cst_9 = arith.constant 1.000000e+00 : f32
    %29 = vector.broadcast %cst_9 : f32 to vector<8x1xf32>
    %30 = arith.subf %29, %28 : vector<8x1xf32>
    %31 = arith.mulf %30, %30 : vector<8x1xf32>
    %cst_10 = arith.constant 0.000000e+00 : f32
    %32 = vector.broadcast %cst_10 : f32 to vector<8x1xf32>
    %33 = arith.subf %32, %24 : vector<8x1xf32>
    %34 = arith.mulf %33, %31 : vector<8x1xf32>
    %35 = arith.mulf %34, %27 : vector<8x1xf32>
    %36 = tpu.iota {dimensions = array<i32: 0>} : vector<8x1xi32>
    %c8_i32 = arith.constant 8 : i32
    %37 = arith.muli %arg0, %c8_i32 : i32
    %38 = vector.broadcast %37 : i32 to vector<8x1xi32>
    %39 = arith.addi %36, %38 : vector<8x1xi32>
    %c8_i32_11 = arith.constant 8 : i32
    %40 = vector.broadcast %c8_i32_11 : i32 to vector<8x1xi32>
    %41 = arith.cmpi slt, %39, %40 : vector<8x1xi32>
    %cst_12 = arith.constant 0.000000e+00 : f32
    %42 = vector.broadcast %cst_12 : f32 to vector<8x1xf32>
    %43 = arith.select %41, %35, %42 : vector<8x1xi1>, vector<8x1xf32>
    %c0_13 = arith.constant 0 : index
    %c0_14 = arith.constant 0 : index
    %44 = vector.load %arg5[%c0_13, %c0_14] : memref<1x1xf32, #tpu.memory_space<vmem>>, vector<1x1xf32>
    %45 = vector.shape_cast %43 : vector<8x1xf32> to vector<1x8x1xf32>
    %cst_15 = arith.constant dense<0.000000e+00> : vector<1xf32>
    %46 = vector.multi_reduction <add>, %45, %cst_15 [1, 2] : vector<1x8x1xf32> to vector<1xf32>
    %47 = vector.shape_cast %46 : vector<1xf32> to vector<1x1x1xf32>
    %48 = vector.extract %47[0, 0, 0] : f32 from vector<1x1x1xf32>
    %49 = vector.broadcast %48 : f32 to vector<1x1xf32>
    %50 = arith.addf %44, %49 : vector<1x1xf32>
    %c0_16 = arith.constant 0 : index
    %c0_17 = arith.constant 0 : index
    %51 = vector.load %arg5[%c0_16, %c0_17] : memref<1x1xf32, #tpu.memory_space<vmem>>, vector<1x1xf32>
    tpu.vector_store %arg5[%c0_16, %c0_17], %50 {strides = array<i32>} : memref<1x1xf32, #tpu.memory_space<vmem>>, vector<1x1xf32>,
    %c0_i32_18 = arith.constant 0 : i32
    %52 = arith.cmpi eq, %arg0, %c0_i32_18 : i32
    %53 = arith.extui %52 : i1 to i32
    %c0_i32_19 = arith.constant 0 : i32
    %54 = arith.cmpi ne, %53, %c0_i32_19 : i32
    scf.if %54 {
      %c0_20 = arith.constant 0 : index
      %c0_21 = arith.constant 0 : index
      %55 = vector.load %arg5[%c0_20, %c0_21] : memref<1x1xf32, #tpu.memory_space<vmem>>, vector<1x1xf32>
      %cst_22 = arith.constant 1.250000e-01 : f32
      %56 = vector.broadcast %cst_22 : f32 to vector<1x1xf32>
      %57 = arith.mulf %55, %56 : vector<1x1xf32>
      %c0_23 = arith.constant 0 : index
      %c0_24 = arith.constant 0 : index
      %58 = vector.load %arg4[%c0_23, %c0_24] : memref<1x1xf32, #tpu.memory_space<vmem>>, vector<1x1xf32>
      tpu.vector_store %arg4[%c0_23, %c0_24], %57 {strides = array<i32>} : memref<1x1xf32, #tpu.memory_space<vmem>>, vector<1x1xf32>,
    } else {
    }
    return
  }
  func.func @transform_0(%arg0: i32) -> (i32, i32) {
    %c0_i32 = arith.constant 0 : i32
    %c0_i32_0 = arith.constant 0 : i32
    return %arg0, %c0_i32 : i32, i32
  }
  func.func @transform_1(%arg0: i32) -> (i32, i32) {
    %c0_i32 = arith.constant 0 : i32
    %c0_i32_0 = arith.constant 0 : i32
    return %arg0, %c0_i32 : i32, i32
  }
  func.func @transform_2(%arg0: i32) -> (i32, i32) {
    %c0_i32 = arith.constant 0 : i32
    %c0_i32_0 = arith.constant 0 : i32
    %c0_i32_1 = arith.constant 0 : i32
    return %c0_i32, %c0_i32_0 : i32, i32
  }
  func.func @transform_3(%arg0: i32) -> (i32, i32) {
    %c0_i32 = arith.constant 0 : i32
    %c0_i32_0 = arith.constant 0 : i32
    %c0_i32_1 = arith.constant 0 : i32
    return %c0_i32, %c0_i32_0 : i32, i32
  }
}

</mosaic_0001>

<bundles_post_ra>
// kernel: tpu_custom_call.1
= control target key start
LH: loop header
LB: loop body
LE: loop exit
PB: predicated region body
PF: predicated region fallthrough
CT: control target
= control target key end

     0   :  { %vm24_vm0 = vcmask 31744   ;;  %s188_s0 = inlined_call_operand.vmem [shape: f32[8,4], index: 0, kind: input, shape index: {}]   ;;  %s189_s1 = inlined_call_operand.vmem [shape: s32[8,1], index: 1, kind: input, shape index: {}]   ;;  %s190_s2 = inlined_call_operand.vmem [shape: f32[1,4], index: 2, kind: input, shape index: {}]   ;;  %s191_s3 = inlined_call_operand.hbm [shape: f32[1,1], index: 3, kind: output, shape index: {}]  }
   0x1   :  { %v21_v0 = vld [vmem:[%s188_s0] sm:$0xff] }
   0x2   :  { %8 = vsyncpa [#allocation4], 0  ;;  %v25_v1 = vsel %vm24_vm0, %v21_v0, -inf  ;;  %v146_v2 = vmov 0   ;;  %vm19_vm1 = vcmask 0   ;;  %v147_v3 = vmov 0.0  }
   0x3   :  { %117 = vset.pattern.permute.xlu0 %v146_v2  ;;  %20 = vst.msk [vmem:[#allocation2] sm:$0x1] %vm19_vm1, %v147_v3  ;;  %v22_v4 = vld [vmem:[%s189_s1] sm:$0xff]  ;;  %v34_v8 = vlaneseq  ;;  %vm75_vm3 = vcmask 7168  }
   0x4   :  { %26 = vmax.xlane.f32.xlu0 %v25_v1  ;;  %v111_v14 = vld [vmem:[%s190_s2] ss:$0 sm:$0xff]  ;;  %s148_s2 = smov [#allocation3]  }
   0x5   :  { %v35_v9 = vand.u32 127, %v34_v8  ;;  %s102_s17 = sshll.u32 %s148_s2, 4  ;;  %s103_s17 = int_to_ptr.vmem [resolvable:$true] %s102_s17 }
   0x6   :  { %s124_s18 = scalar_lea.vmem %s103_s17, 16  ;;  %s128_s19 = scalar_lea.vmem %s103_s17, 32 }
   0x7   :  { %p125_p0 = scmp.ne.s32.totalorder %s103_s17, %s124_s18  ;;  %p129_p1 = scmp.lt.s32.totalorder %s103_s17, %s103_s17 }
   0x8   :  { %p130_p2 = scmp.lt.s32.totalorder %s128_s19, %s124_s18 }
   0xa   :  { %v74_v41 = vld [vmem:[#allocation2] sm:$0x1]  ;;  %p131_p3 = por %p130_p2, %p129_p1 }
   0xc   :  { %p132_p4 = pnand %p131_p3, %p125_p0 }
  0x1a   :  { %37 = vperm.xlu0 %117, %v22_v4  }
  0x8d   :  { %v27_v5 = vpop.xlane.xlu0 %26 }
  0x8e   :  { %v28_v6 = vsub.f32 %v21_v0, %v27_v5 }
  0x90   :  { %v29_v7 = vmul.f32 1.442695, %v28_v6 }
  0x92   :  { %118 = vpow2.f32 %v29_v7 }
  0x95   :  { %v38_v10 = vpop.permute.xlu0 %37 }
  0x96   :  { %vm39_vm2 = vcmp.eq.s32.totalorder %v35_v9, %v38_v10 }
  0x97   :  { %v110_v11 = vsel %vm39_vm2, 1.0, %v147_v3 }
  0x98   :  { %v42_v12 = vmul.f32 %v110_v11, %v21_v0  ;;  %v52_v17 = vmul.f32 %v111_v14, %v110_v11 }
  0x9a   :  { %v43_v16 = vsel %vm24_vm0, %v42_v12, 0.0  ;;  %v53_v18 = vsel %vm24_vm0, %v52_v17, 0.0 }
  0x9f   :  { %v119_v13 = vpop.eup %118 }
  0xa0   :  { %v31_v15 = vsel %vm24_vm0, %v119_v13, 0.0 }
  0xa1   :  { %32 = vadd.xlane.f32.xlu1 %v31_v15 }
  0xa5   :  { %44 = vadd.xlane.f32.xlu1 %v43_v16 }
  0xa9   :  { %54 = vadd.xlane.f32.xlu1 %v53_v18 }
 0x12a   :  { %v33_v19 = vpop.xlane.xlu1 %32 }
 0x12b   :  { %120 = vlog2.f32 %v33_v19 }
 0x12e   :  { %v45_v20 = vpop.xlane.xlu1 %44 }
 0x12f   :  { %v56_v23 = vsub.f32 %v45_v20, %v27_v5 }
 0x132   :  { %v55_v27 = vpop.xlane.xlu1 %54 }
 0x133   :  { %v64_v30 = vsub.f32 0.0, %v55_v27 }
 0x138   :  { %v121_v21 = vpop.eup %120 }
 0x139   :  { %v58_v22 = vmul.f32 0.6931472, %v121_v21 }
 0x13b   :  { %v59_v24 = vsub.f32 %v56_v23, %v58_v22 }
 0x13d   :  { %v60_v25 = vmul.f32 1.442695, %v59_v24 }
 0x13f   :  { %122 = vpow2.f32 %v60_v25 }
 0x14c   :  { %v123_v26 = vpop.eup %122 }
 0x14d   :  { %v62_v28 = vsub.f32 1.0, %v123_v26 }
 0x14f   :  { %v63_v29 = vmul.f32 %v62_v28, %v62_v28 }
 0x151   :  { %v65_v31 = vmul.f32 %v64_v30, %v63_v29 }
 0x153   :  { %v66_v32 = vmul.f32 %v65_v31, %v59_v24 }
 0x155   :  { %v76_v33 = vsel %vm75_vm3, %v66_v32, 0.0 }
 0x156   :  { %77 = vadd.xlane.f32.xlu1 %v76_v33 }
 0x1df   :  { %v78_v34 = vpop.xlane.xlu1 %77 }
 0x1e0   :  { %v79_v35 = vrot.slane %v78_v34, 4 }
 0x1e2   :  { %v80_v36 = vadd.f32 %v79_v35, %v78_v34 }
 0x1e4   :  { %v81_v37 = vrot.slane %v80_v36, 2 }
 0x1e6   :  { %v82_v38 = vadd.f32 %v81_v37, %v80_v36 }
 0x1e8   :  { %v83_v39 = vrot.slane %v82_v38, 1 }
 0x1ea   :  { %v84_v40 = vadd.f32 %v83_v39, %v82_v38 }
 0x1ec   :  { %112 = vpush %v84_v40 }
 0x21d   :  { %s113_s1 = spop %112 }
 0x21e   :  { %v86_v42 = vstv %s113_s1 }
 0x21f   :  { %v87_v43 = vadd.f32 %v86_v42, %v74_v41 }
 0x221   :  { %89 = vst.msk [vmem:[#allocation2] sm:$0x1] %vm19_vm1, %v87_v43 }
 0x228   :  { %v93_v44 = vld [vmem:[#allocation2] sm:$0x1] }
 0x229   :  { %v94_v45 = vmul.f32 0.125, %v93_v44 }
 0x22b   :  { %95 = vst.msk [vmem:[#allocation3] sm:$0x1] %vm19_vm1, %v94_v45 }
 0x22c   :  { %135 = shalt.err (!%p132_p4)
}
 0x22d   :  { %105 = dma.vmem_to_hbm [thread:$0]  %s103_s17, 16, %s191_s3, [#allocation4]  }
 0x22e   :  { %144 = dma.done.wait [#allocation4], 16  }
 0x22f   :  { %145 = vsyncadd [#allocation4], 4294967280 }
 0x230   :  { %109 = vsyncpa [#allocation4], 1 }

</bundles_post_ra>
